<compile_context>
chip_gen: v7x
topology: tpu7x:2x2x1
jax: 0.10.0
libtpu: 0.0.40
codegen_flags: <defaults>
</compile_context>

<pallas_src>
import jax
import jax.numpy as jnp
from jax.experimental import pallas as pl
from jax.experimental.pallas import tpu as pltpu


def _round_up(x, m):
    return (x + m - 1) // m * m


def attack_dnn_kernel(x_ref, w1_ref, b1_ref, w2_ref, b2_ref, w3_ref, b3_ref,
                      w4_ref, b4_ref, w5_ref, b5_ref, out_ref):
    # x_ref: (BM, 2*H*W) f32 raw input rows.  Conv + im2col are pre-folded into
    # w1_ref on the host, so the whole network is 5 MXU matmuls + bias/ReLU.
    x = x_ref[...].astype(jnp.bfloat16)

    def dense(h, w_ref, b_ref, relu):
        y = jnp.dot(h, w_ref[...], preferred_element_type=jnp.float32) + b_ref[...]
        return jnp.maximum(y, 0.0) if relu else y

    h = dense(x, w1_ref, b1_ref, True).astype(jnp.bfloat16)    # (BM, 256)
    h = dense(h, w2_ref, b2_ref, True).astype(jnp.bfloat16)    # (BM, 128)
    h = dense(h, w3_ref, b3_ref, True).astype(jnp.bfloat16)    # (BM, 64)
    h = dense(h, w4_ref, b4_ref, True).astype(jnp.bfloat16)    # (BM, 32)
    out_ref[...] = dense(h, w5_ref, b5_ref, False).astype(out_ref.dtype)  # (BM, 128)
    # TODO(synk): training-mode Dropout(p=0.25) omitted; eval-mode (identity) semantics used.


def attack_dnn_forward(x, params, *, block_m=1024):
    """x: (B, H, 2, W) float32 — same tensor the PyTorch module receives."""
    B, H, two, W = x.shape
    assert two == 2 and H % 2 == 0 and W % 2 == 0
    OH, OW = H // 2, W // 2
    D = OH * OW                                   # == input_dim
    Din = 2 * H * W                               # raw flattened row length

    (wc, bc, w1, b1, w2, b2, w3, b3, w4, b4, w5, b5) = params

    # ---- fold Conv2d(2,1,2,2) + im2col layout into the first matmul ---------
    # x.reshape(B, Din) element (h, c, w) sits at flat index h*2*W + c*W + w, so
    # W1_eff[h*2*W + c*W + w, n] = wc[c, h%2, w%2] * w1[(h//2)*OW + (w//2), n].
    wconv = wc.reshape(2, 2, 2)                                 # (c, kh, kw)
    w1r = w1.reshape(OH, OW, w1.shape[1])
    w1_eff = (jnp.transpose(wconv, (1, 0, 2))[None, :, :, None, :, None] *
              w1r[:, None, None, :, None, :]).reshape(Din, w1.shape[1])
    b1_eff = (b1 + bc[0, 0] * jnp.sum(w1, axis=0, keepdims=True)).astype(jnp.float32)

    # final layer padded to 128 lanes for an unmasked lane-dense store
    NO = 128
    w5p = jnp.pad(w5, ((0, 0), (0, NO - w5.shape[1]))).astype(jnp.bfloat16)
    b5p = jnp.pad(b5, ((0, 0), (0, NO - b5.shape[1]))).astype(jnp.float32)

    weights = (w1_eff.astype(jnp.bfloat16), b1_eff,
               w2.astype(jnp.bfloat16), b2.astype(jnp.float32),
               w3.astype(jnp.bfloat16), b3.astype(jnp.float32),
               w4.astype(jnp.bfloat16), b4.astype(jnp.float32),
               w5p, b5p)

    # ---- chip-aware VMEM ceiling --------------------------------------------
    try:
        vmem_cap = int(pltpu.get_tpu_info().vmem_capacity_bytes)
    except Exception:
        vmem_cap = 64 << 20                       # conservative (v7x per-TC)
    vmem_ceiling = max(16 << 20, (vmem_cap * 3) // 4)

    # ---- batch tile: multiple of 16, bounded padding, grid >= 2 if B moderate
    # cap BM so the double-buffered f32 input tile stays well under the ceiling
    bm_cap = max(16, ((vmem_ceiling // 2) // (2 * Din * 4)) // 16 * 16)
    block_m = max(16, min(block_m, bm_cap))
    n_tiles = pl.cdiv(B, block_m)
    if B >= 32:
        n_tiles = max(n_tiles, 2)                 # let v7x's second TC do work
    BM = max(16, min(block_m, _round_up(pl.cdiv(B, n_tiles), 16)))
    Bp = _round_up(B, BM)

    # free reshape of the contiguous input; only pad the (small) batch remainder
    x_flat = x.reshape(B, Din)
    if Bp != B:
        x_flat = jnp.pad(x_flat, ((0, Bp - B), (0, 0)))

    inputs = (x_flat,) + weights

    in_specs = ([pl.BlockSpec((BM, Din), lambda i: (i, 0))]
                + [pl.BlockSpec(a.shape, lambda i: (0, 0)) for a in weights])
    out_spec = pl.BlockSpec((BM, NO), lambda i: (i, 0))

    # ---- explicit VMEM budget: 2x-buffered streams + resident weights -------
    weight_bytes = sum(int(a.size) * a.dtype.itemsize for a in weights)
    io_bytes = 2 * BM * Din * 4 + 2 * BM * NO * 2
    act_bytes = BM * (2 * Din + 6 * (256 + 128 + 64 + 32 + NO))
    budget = io_bytes + 2 * weight_bytes + act_bytes
    vmem_limit = int(min(max(2 * budget, 16 << 20), vmem_ceiling))

    out = pl.pallas_call(
        attack_dnn_kernel,
        out_shape=jax.ShapeDtypeStruct((Bp, NO), jnp.bfloat16),
        grid_spec=pltpu.PrefetchScalarGridSpec(
            num_scalar_prefetch=0,
            grid=(Bp // BM,),
            in_specs=in_specs,
            out_specs=out_spec,
        ),
        compiler_params=pltpu.CompilerParams(
            dimension_semantics=("parallel",),
            vmem_limit_bytes=vmem_limit),
    )(*inputs)
    return out[:B, :3].astype(jnp.float32)


def make_params(key, input_dim):
    ks = jax.random.split(key, 12)
    f32 = jnp.float32

    def w(k, shape, scale):
        return jax.random.normal(k, shape, f32) * scale

    wc = w(ks[0], (8, 1), 0.2)                  # conv weight (c,kh,kw) flattened
    bc = w(ks[1], (1, 1), 0.1)                  # conv bias
    w1 = w(ks[2], (input_dim, 256), 0.05); b1 = w(ks[3], (1, 256), 0.05)
    w2 = w(ks[4], (256, 128), 0.05);       b2 = w(ks[5], (1, 128), 0.05)
    w3 = w(ks[6], (128, 64), 0.05);        b3 = w(ks[7], (1, 64), 0.05)
    w4 = w(ks[8], (64, 32), 0.05);         b4 = w(ks[9], (1, 32), 0.05)
    w5 = w(ks[10], (32, 3), 0.05);         b5 = w(ks[11], (1, 3), 0.05)
    return (wc, bc, w1, b1, w2, b2, w3, b3, w4, b4, w5, b5)


def reference_forward(x, params):
    """Pure-JAX f32 reference mirroring the PyTorch forward (eval mode)."""
    (wc, bc, w1, b1, w2, b2, w3, b3, w4, b4, w5, b5) = params
    B, H, two, W = x.shape
    OH, OW = H // 2, W // 2
    D = OH * OW
    xt = jnp.transpose(x, (0, 2, 1, 3))                       # (B,2,H,W)
    wconv = wc.reshape(2, 2, 2)                               # (c,kh,kw)
    conv = jax.lax.conv_general_dilated(
        xt, wconv[None], window_strides=(2, 2), padding="VALID",
        dimension_numbers=("NCHW", "OIHW", "NCHW")) + bc[0, 0]
    h = conv.reshape(B, D)
    h = jnp.maximum(h @ w1 + b1, 0.0)
    h = jnp.maximum(h @ w2 + b2, 0.0)
    h = jnp.maximum(h @ w3 + b3, 0.0)
    h = jnp.maximum(h @ w4 + b4, 0.0)
    return h @ w5 + b5


if __name__ == "__main__":
    B, H, W = 2, 16, 16
    input_dim = (H // 2) * (W // 2)             # 64

    key = jax.random.PRNGKey(0)
    kx, kp = jax.random.split(key)
    x = jax.random.normal(kx, (B, H, 2, W), jnp.float32)
    params = make_params(kp, input_dim)

    out = attack_dnn_forward(x, params)
    out = jax.block_until_ready(out)

    ref = reference_forward(x, params)
    assert out.shape == (B, 3)
    # bf16 matmul operands + bf16 output (f32 accumulation) -> loose tolerance.
    assert jnp.allclose(out, ref, atol=5e-2, rtol=5e-2), (out, ref)

    print("KERNEL_OK")
</pallas_src>

<mosaic_0001>
module attributes {stable_mosaic.version = 11 : i64} {
  func.func @attack_dnn_kernel(%arg0: i32, %arg1: memref<16x512xf32, #tpu.memory_space<vmem>>, %arg2: memref<512x256xbf16, #tpu.memory_space<vmem>>, %arg3: memref<1x256xf32, #tpu.memory_space<vmem>>, %arg4: memref<256x128xbf16, #tpu.memory_space<vmem>>, %arg5: memref<1x128xf32, #tpu.memory_space<vmem>>, %arg6: memref<128x64xbf16, #tpu.memory_space<vmem>>, %arg7: memref<1x64xf32, #tpu.memory_space<vmem>>, %arg8: memref<64x32xbf16, #tpu.memory_space<vmem>>, %arg9: memref<1x32xf32, #tpu.memory_space<vmem>>, %arg10: memref<32x128xbf16, #tpu.memory_space<vmem>>, %arg11: memref<1x128xf32, #tpu.memory_space<vmem>>, %arg12: memref<16x128xbf16, #tpu.memory_space<vmem>>) attributes {dimension_semantics = [#tpu.dimension_semantics<parallel>], iteration_bounds = array<i64: 1>, scalar_prefetch = 0 : i64, scratch_operands = 0 : i64, tpu.core_type = #tpu.core_type<tc>, window_params = [{transform_indices = @transform_0, window_bounds = array<i64: 16, 512>}, {pipeline_mode = #tpu.pipeline_mode<synchronous>, transform_indices = @transform_1, window_bounds = array<i64: 512, 256>}, {pipeline_mode = #tpu.pipeline_mode<synchronous>, transform_indices = @transform_2, window_bounds = array<i64: 1, 256>}, {pipeline_mode = #tpu.pipeline_mode<synchronous>, transform_indices = @transform_3, window_bounds = array<i64: 256, 128>}, {pipeline_mode = #tpu.pipeline_mode<synchronous>, transform_indices = @transform_4, window_bounds = array<i64: 1, 128>}, {pipeline_mode = #tpu.pipeline_mode<synchronous>, transform_indices = @transform_5, window_bounds = array<i64: 128, 64>}, {pipeline_mode = #tpu.pipeline_mode<synchronous>, transform_indices = @transform_6, window_bounds = array<i64: 1, 64>}, {pipeline_mode = #tpu.pipeline_mode<synchronous>, transform_indices = @transform_7, window_bounds = array<i64: 64, 32>}, {pipeline_mode = #tpu.pipeline_mode<synchronous>, transform_indices = @transform_8, window_bounds = array<i64: 1, 32>}, {pipeline_mode = #tpu.pipeline_mode<synchronous>, transform_indices = @transform_9, window_bounds = array<i64: 32, 128>}, {pipeline_mode = #tpu.pipeline_mode<synchronous>, transform_indices = @transform_10, window_bounds = array<i64: 1, 128>}, {transform_indices = @transform_11, window_bounds = array<i64: 16, 128>}]} {
    %c0 = arith.constant 0 : index
    %c0_0 = arith.constant 0 : index
    %0 = vector.load %arg1[%c0, %c0_0] : memref<16x512xf32, #tpu.memory_space<vmem>>, vector<16x512xf32>
    %1 = arith.truncf %0 : vector<16x512xf32> to vector<16x512xbf16>
    %c0_1 = arith.constant 0 : index
    %c0_2 = arith.constant 0 : index
    %2 = vector.load %arg2[%c0_1, %c0_2] : memref<512x256xbf16, #tpu.memory_space<vmem>>, vector<512x256xbf16>
    %cst = arith.constant dense<0.000000e+00> : vector<16x256xf32>
    %3 = tpu.matmul %1, %2, %cst {dimension_numbers = #tpu.dot_dimension_numbers<[1], [0], [0], [1], [0, 0, 1, 1], [], []>} : vector<16x512xbf16>, vector<512x256xbf16>, vector<16x256xf32> -> vector<16x256xf32>
    %c0_3 = arith.constant 0 : index
    %c0_4 = arith.constant 0 : index
    %4 = vector.load %arg3[%c0_3, %c0_4] : memref<1x256xf32, #tpu.memory_space<vmem>>, vector<1x256xf32>
    %5 = vector.broadcast %4 : vector<1x256xf32> to vector<16x256xf32>
    %6 = arith.addf %3, %5 : vector<16x256xf32>
    %cst_5 = arith.constant 0.000000e+00 : f32
    %7 = vector.broadcast %cst_5 : f32 to vector<16x256xf32>
    %8 = arith.maximumf %6, %7 : vector<16x256xf32>
    %9 = arith.truncf %8 : vector<16x256xf32> to vector<16x256xbf16>
    %c0_6 = arith.constant 0 : index
    %c0_7 = arith.constant 0 : index
    %10 = vector.load %arg4[%c0_6, %c0_7] : memref<256x128xbf16, #tpu.memory_space<vmem>>, vector<256x128xbf16>
    %cst_8 = arith.constant dense<0.000000e+00> : vector<16x128xf32>
    %11 = tpu.matmul %9, %10, %cst_8 {dimension_numbers = #tpu.dot_dimension_numbers<[1], [0], [0], [1], [0, 0, 1, 1], [], []>} : vector<16x256xbf16>, vector<256x128xbf16>, vector<16x128xf32> -> vector<16x128xf32>
    %c0_9 = arith.constant 0 : index
    %c0_10 = arith.constant 0 : index
    %12 = vector.load %arg5[%c0_9, %c0_10] : memref<1x128xf32, #tpu.memory_space<vmem>>, vector<1x128xf32>
    %13 = vector.broadcast %12 : vector<1x128xf32> to vector<16x128xf32>
    %14 = arith.addf %11, %13 : vector<16x128xf32>
    %cst_11 = arith.constant 0.000000e+00 : f32
    %15 = vector.broadcast %cst_11 : f32 to vector<16x128xf32>
    %16 = arith.maximumf %14, %15 : vector<16x128xf32>
    %17 = arith.truncf %16 : vector<16x128xf32> to vector<16x128xbf16>
    %c0_12 = arith.constant 0 : index
    %c0_13 = arith.constant 0 : index
    %18 = vector.load %arg6[%c0_12, %c0_13] : memref<128x64xbf16, #tpu.memory_space<vmem>>, vector<128x64xbf16>
    %cst_14 = arith.constant dense<0.000000e+00> : vector<16x64xf32>
    %19 = tpu.matmul %17, %18, %cst_14 {dimension_numbers = #tpu.dot_dimension_numbers<[1], [0], [0], [1], [0, 0, 1, 1], [], []>} : vector<16x128xbf16>, vector<128x64xbf16>, vector<16x64xf32> -> vector<16x64xf32>
    %c0_15 = arith.constant 0 : index
    %c0_16 = arith.constant 0 : index
    %20 = vector.load %arg7[%c0_15, %c0_16] : memref<1x64xf32, #tpu.memory_space<vmem>>, vector<1x64xf32>
    %21 = vector.broadcast %20 : vector<1x64xf32> to vector<16x64xf32>
    %22 = arith.addf %19, %21 : vector<16x64xf32>
    %cst_17 = arith.constant 0.000000e+00 : f32
    %23 = vector.broadcast %cst_17 : f32 to vector<16x64xf32>
    %24 = arith.maximumf %22, %23 : vector<16x64xf32>
    %25 = arith.truncf %24 : vector<16x64xf32> to vector<16x64xbf16>
    %c0_18 = arith.constant 0 : index
    %c0_19 = arith.constant 0 : index
    %26 = vector.load %arg8[%c0_18, %c0_19] : memref<64x32xbf16, #tpu.memory_space<vmem>>, vector<64x32xbf16>
    %cst_20 = arith.constant dense<0.000000e+00> : vector<16x32xf32>
    %27 = tpu.matmul %25, %26, %cst_20 {dimension_numbers = #tpu.dot_dimension_numbers<[1], [0], [0], [1], [0, 0, 1, 1], [], []>} : vector<16x64xbf16>, vector<64x32xbf16>, vector<16x32xf32> -> vector<16x32xf32>
    %c0_21 = arith.constant 0 : index
    %c0_22 = arith.constant 0 : index
    %28 = vector.load %arg9[%c0_21, %c0_22] : memref<1x32xf32, #tpu.memory_space<vmem>>, vector<1x32xf32>
    %29 = vector.broadcast %28 : vector<1x32xf32> to vector<16x32xf32>
    %30 = arith.addf %27, %29 : vector<16x32xf32>
    %cst_23 = arith.constant 0.000000e+00 : f32
    %31 = vector.broadcast %cst_23 : f32 to vector<16x32xf32>
    %32 = arith.maximumf %30, %31 : vector<16x32xf32>
    %33 = arith.truncf %32 : vector<16x32xf32> to vector<16x32xbf16>
    %c0_24 = arith.constant 0 : index
    %c0_25 = arith.constant 0 : index
    %34 = vector.load %arg10[%c0_24, %c0_25] : memref<32x128xbf16, #tpu.memory_space<vmem>>, vector<32x128xbf16>
    %cst_26 = arith.constant dense<0.000000e+00> : vector<16x128xf32>
    %35 = tpu.matmul %33, %34, %cst_26 {dimension_numbers = #tpu.dot_dimension_numbers<[1], [0], [0], [1], [0, 0, 1, 1], [], []>} : vector<16x32xbf16>, vector<32x128xbf16>, vector<16x128xf32> -> vector<16x128xf32>
    %c0_27 = arith.constant 0 : index
    %c0_28 = arith.constant 0 : index
    %36 = vector.load %arg11[%c0_27, %c0_28] : memref<1x128xf32, #tpu.memory_space<vmem>>, vector<1x128xf32>
    %37 = vector.broadcast %36 : vector<1x128xf32> to vector<16x128xf32>
    %38 = arith.addf %35, %37 : vector<16x128xf32>
    %39 = arith.truncf %38 : vector<16x128xf32> to vector<16x128xbf16>
    %c0_29 = arith.constant 0 : index
    %c0_30 = arith.constant 0 : index
    %40 = vector.load %arg12[%c0_29, %c0_30] : memref<16x128xbf16, #tpu.memory_space<vmem>>, vector<16x128xbf16>
    tpu.vector_store %arg12[%c0_29, %c0_30], %39 {strides = array<i32>} : memref<16x128xbf16, #tpu.memory_space<vmem>>, vector<16x128xbf16>,
    return
  }
  func.func @transform_0(%arg0: i32) -> (i32, i32) {
    %c0_i32 = arith.constant 0 : i32
    %c0_i32_0 = arith.constant 0 : i32
    return %arg0, %c0_i32 : i32, i32
  }
  func.func @transform_1(%arg0: i32) -> (i32, i32) {
    %c0_i32 = arith.constant 0 : i32
    %c0_i32_0 = arith.constant 0 : i32
    %c0_i32_1 = arith.constant 0 : i32
    return %c0_i32, %c0_i32_0 : i32, i32
  }
  func.func @transform_2(%arg0: i32) -> (i32, i32) {
    %c0_i32 = arith.constant 0 : i32
    %c0_i32_0 = arith.constant 0 : i32
    %c0_i32_1 = arith.constant 0 : i32
    return %c0_i32, %c0_i32_0 : i32, i32
  }
  func.func @transform_3(%arg0: i32) -> (i32, i32) {
    %c0_i32 = arith.constant 0 : i32
    %c0_i32_0 = arith.constant 0 : i32
    %c0_i32_1 = arith.constant 0 : i32
    return %c0_i32, %c0_i32_0 : i32, i32
  }
  func.func @transform_4(%arg0: i32) -> (i32, i32) {
    %c0_i32 = arith.constant 0 : i32
    %c0_i32_0 = arith.constant 0 : i32
    %c0_i32_1 = arith.constant 0 : i32
    return %c0_i32, %c0_i32_0 : i32, i32
  }
  func.func @transform_5(%arg0: i32) -> (i32, i32) {
    %c0_i32 = arith.constant 0 : i32
    %c0_i32_0 = arith.constant 0 : i32
    %c0_i32_1 = arith.constant 0 : i32
    return %c0_i32, %c0_i32_0 : i32, i32
  }
  func.func @transform_6(%arg0: i32) -> (i32, i32) {
    %c0_i32 = arith.constant 0 : i32
    %c0_i32_0 = arith.constant 0 : i32
    %c0_i32_1 = arith.constant 0 : i32
    return %c0_i32, %c0_i32_0 : i32, i32
  }
  func.func @transform_7(%arg0: i32) -> (i32, i32) {
    %c0_i32 = arith.constant 0 : i32
    %c0_i32_0 = arith.constant 0 : i32
    %c0_i32_1 = arith.constant 0 : i32
    return %c0_i32, %c0_i32_0 : i32, i32
  }
  func.func @transform_8(%arg0: i32) -> (i32, i32) {
    %c0_i32 = arith.constant 0 : i32
    %c0_i32_0 = arith.constant 0 : i32
    %c0_i32_1 = arith.constant 0 : i32
    return %c0_i32, %c0_i32_0 : i32, i32
  }
  func.func @transform_9(%arg0: i32) -> (i32, i32) {
    %c0_i32 = arith.constant 0 : i32
    %c0_i32_0 = arith.constant 0 : i32
    %c0_i32_1 = arith.constant 0 : i32
    return %c0_i32, %c0_i32_0 : i32, i32
  }
  func.func @transform_10(%arg0: i32) -> (i32, i32) {
    %c0_i32 = arith.constant 0 : i32
    %c0_i32_0 = arith.constant 0 : i32
    %c0_i32_1 = arith.constant 0 : i32
    return %c0_i32, %c0_i32_0 : i32, i32
  }
  func.func @transform_11(%arg0: i32) -> (i32, i32) {
    %c0_i32 = arith.constant 0 : i32
    %c0_i32_0 = arith.constant 0 : i32
    return %arg0, %c0_i32 : i32, i32
  }
}

</mosaic_0001>

<bundles_post_ra>
// kernel: tpu_custom_call.1
= control target key start
LH: loop header
LB: loop body
LE: loop exit
PB: predicated region body
PF: predicated region fallthrough
CT: control target
= control target key end

     0   :  { %16 = vsyncpa [#allocation3], 0  ;;  %s1818_s0 = inlined_call_operand.hbm [shape: f32[16,512], index: 0, kind: input, shape index: {}]   ;;  %s1819_s1 = inlined_call_operand.hbm [shape: bf16[512,256], index: 1, kind: input, shape index: {}]   ;;  %s1820_s2 = inlined_call_operand.vmem [shape: f32[1,256], index: 2, kind: input, shape index: {}]   ;;  %s1821_s3 = inlined_call_operand.vmem [shape: bf16[256,128], index: 3, kind: input, shape index: {}]   ;;  %s1822_s4 = inlined_call_operand.hbm [shape: f32[1,128], index: 4, kind: input, shape index: {}]   ;;  %s1823_s5 = inlined_call_operand.vmem [shape: bf16[128,64], index: 5, kind: input, shape index: {}]   ;;  %s1824_s6 = inlined_call_operand.hbm [shape: f32[1,64], index: 6, kind: input, shape index: {}]   ;;  %s1825_s7 = inlined_call_operand.vmem [shape: bf16[64,32], index: 7, kind: input, shape index: {}]   ;;  %s1826_s8 = inlined_call_operand.hbm [shape: f32[1,32], index: 8, kind: input, shape index: {}]   ;;  %s1827_s9 = inlined_call_operand.vmem [shape: bf16[32,128], index: 9, kind: input, shape index: {}]   ;;  %s1828_s10 = inlined_call_operand.vmem [shape: f32[1,128], index: 10, kind: input, shape index: {}]   ;;  %s1829_s11 = inlined_call_operand.hbm [shape: bf16[16,128], index: 11, kind: output, shape index: {}]  }
   0x1   :  { %17 = vsyncpa [#allocation6], 0 }
   0x2   :  { %18 = vsyncpa [#allocation9], 0 }
   0x3   :  { %19 = vsyncpa [#allocation4], 0  ;;  %s1556_s17 = smov [#allocation5]   ;;  %s1416_s21 = scalar_lea.hbm %s1819_s1, 8192 }
   0x4   :  { %s37_s18 = sshll.u32 %s1556_s17, 4  ;;  %p1417_p0 = scmp.ne.s32.totalorder %s1819_s1, %s1416_s21  ;;  %s38_s18 = int_to_ptr.vmem [resolvable:$true] %s37_s18 }
   0x5   :  { %p1420_p1 = scmp.lt.u32.totalorder %s1416_s21, %s1819_s1 }
   0x7   :  { %p1422_p2 = pnand %p1420_p1, %p1417_p0 }
   0x9   :  { %1425 = shalt.err (!%p1422_p2)
}
   0xa   :  { %s1426_s26 = scalar_lea.vmem %s38_s18, 8192  ;;  %p1431_p4 = scmp.lt.s32.totalorder %s38_s18, %s38_s18 }
   0xb   :  { %p1427_p3 = scmp.ne.s32.totalorder %s38_s18, %s1426_s26  ;;  %p1432_p5 = scmp.lt.s32.totalorder %s1426_s26, %s1426_s26 }
   0xd   :  { %p1433_p6 = por %p1432_p5, %p1431_p4 }
   0xf   :  { %p1434_p7 = pnand %p1433_p6, %p1427_p3 }
  0x11   :  { %1437 = shalt.err (!%p1434_p7)
}
  0x12   :  { %s1557_s27 = smov 128   ;;  %s1558_s28 = smov 8  }
  0x13   :  { %43 = dma.hbm_to_vmem [thread:$0]  %s1819_s1, 8192, %s38_s18, [#allocation6], %s1557_s27, %s1557_s27, %s1558_s28  }
  0x14   :  { %s1559_s12 = smov [#allocation8]   ;;  %s1560_s14 = smov [#allocation2]  }
  0x15   :  { %s66_s13 = sshll.u32 %s1559_s12, 4  ;;  %s25_s15 = sshll.u32 %s1560_s14, 4  ;;  %s67_s13 = int_to_ptr.vmem [resolvable:$true] %s66_s13  ;;  %s26_s15 = int_to_ptr.vmem [resolvable:$true] %s25_s15 }
  0x16   :  { %s1438_s19 = scalar_lea.hbm %s1824_s6, 16 }
  0x17   :  { %p1439_p8 = scmp.ne.s32.totalorder %s1824_s6, %s1438_s19  ;;  %p1442_p9 = scmp.lt.u32.totalorder %s1438_s19, %s1824_s6 }
  0x19   :  { %p1444_p10 = pnand %p1442_p9, %p1439_p8 }
  0x1b   :  { %1447 = shalt.err (!%p1444_p10)
}
  0x1c   :  { %s1448_s1 = scalar_lea.vmem %s67_s13, 16  ;;  %s1452_s18 = scalar_lea.vmem %s67_s13, 32 }
  0x1d   :  { %p1449_p11 = scmp.ne.s32.totalorder %s67_s13, %s1448_s1  ;;  %p1453_p12 = scmp.lt.s32.totalorder %s67_s13, %s67_s13 }
  0x1e   :  { %p1454_p13 = scmp.lt.s32.totalorder %s1452_s18, %s1448_s1 }
  0x20   :  { %p1455_p0 = por %p1454_p13, %p1453_p12 }
  0x22   :  { %p1456_p1 = pnand %p1455_p0, %p1449_p11 }
  0x24   :  { %1459 = shalt.err (!%p1456_p1)
}
  0x25   :  { %69 = dma.hbm_to_vmem [thread:$0]  %s1824_s6, 16, %s67_s13, [#allocation9]  }
  0x26   :  { %s1460_s28 = scalar_lea.hbm %s1818_s0, 1024 }
  0x27   :  { %p1461_p2 = scmp.ne.s32.totalorder %s1818_s0, %s1460_s28  ;;  %p1464_p3 = scmp.lt.u32.totalorder %s1460_s28, %s1818_s0 }
  0x29   :  { %p1466_p4 = pnand %p1464_p3, %p1461_p2 }
  0x2b   :  { %1469 = shalt.err (!%p1466_p4)
}
  0x2c   :  { %s1470_s16 = scalar_lea.vmem %s26_s15, 1024  ;;  %p1475_p6 = scmp.lt.s32.totalorder %s26_s15, %s26_s15 }
  0x2d   :  { %p1471_p5 = scmp.ne.s32.totalorder %s26_s15, %s1470_s16  ;;  %p1476_p7 = scmp.lt.s32.totalorder %s1470_s16, %s1470_s16 }
  0x2f   :  { %p1477_p8 = por %p1476_p7, %p1475_p6 }
  0x31   :  { %p1478_p9 = pnand %p1477_p8, %p1471_p5 }
  0x33   :  { %1481 = shalt.err (!%p1478_p9)
}
  0x34   :  { %s1561_s6 = smov 512   ;;  %s1562_s13 = smov 32  }
  0x35   :  { %31 = dma.hbm_to_vmem [thread:$0]  %s1818_s0, 1024, %s26_s15, [#allocation3], %s1561_s6, %s1561_s6, %s1562_s13  }
  0x36   :  { %s1563_s20 = smov [#allocation7]   ;;  %s1564_s22 = smov [#allocation10]  }
  0x37   :  { %s54_s21 = sshll.u32 %s1563_s20, 4  ;;  %s78_s23 = sshll.u32 %s1564_s22, 4  ;;  %s55_s21 = int_to_ptr.vmem [resolvable:$true] %s54_s21  ;;  %s79_s23 = int_to_ptr.vmem [resolvable:$true] %s78_s23 }
  0x38   :  { %s1482_s24 = scalar_lea.hbm %s1822_s4, 16 }
  0x39   :  { %p1483_p10 = scmp.ne.s32.totalorder %s1822_s4, %s1482_s24  ;;  %p1486_p11 = scmp.lt.u32.totalorder %s1482_s24, %s1822_s4 }
  0x3b   :  { %p1488_p12 = pnand %p1486_p11, %p1483_p10 }
  0x3d   :  { %1491 = shalt.err (!%p1488_p12)
}
  0x3e   :  { %s1492_s0 = scalar_lea.vmem %s55_s21, 16  ;;  %s1496_s15 = scalar_lea.vmem %s55_s21, 32 }
  0x3f   :  { %p1493_p13 = scmp.ne.s32.totalorder %s55_s21, %s1492_s0  ;;  %p1497_p0 = scmp.lt.s32.totalorder %s55_s21, %s55_s21 }
  0x40   :  { %p1498_p1 = scmp.lt.s32.totalorder %s1496_s15, %s1492_s0 }
  0x42   :  { %p1499_p2 = por %p1498_p1, %p1497_p0 }
  0x44   :  { %p1500_p3 = pnand %p1499_p2, %p1493_p13 }
  0x46   :  { %1503 = shalt.err (!%p1500_p3)
}
  0x47   :  { %57 = dma.hbm_to_vmem [thread:$0]  %s1822_s4, 16, %s55_s21, [#allocation6]  }
  0x48   :  { %s1504_s16 = scalar_lea.hbm %s1826_s8, 16 }
  0x49   :  { %p1505_p4 = scmp.ne.s32.totalorder %s1826_s8, %s1504_s16  ;;  %p1508_p5 = scmp.lt.u32.totalorder %s1504_s16, %s1826_s8 }
  0x4b   :  { %p1510_p6 = pnand %p1508_p5, %p1505_p4 }
  0x4d   :  { %1513 = shalt.err (!%p1510_p6)
}
  0x4e   :  { %s1514_s20 = scalar_lea.vmem %s79_s23, 16  ;;  %s1518_s22 = scalar_lea.vmem %s79_s23, 32 }
  0x4f   :  { %p1515_p7 = scmp.ne.s32.totalorder %s79_s23, %s1514_s20  ;;  %p1519_p8 = scmp.lt.s32.totalorder %s79_s23, %s79_s23 }
  0x50   :  { %p1520_p9 = scmp.lt.s32.totalorder %s1518_s22, %s1514_s20 }
  0x52   :  { %p1521_p10 = por %p1520_p9, %p1519_p8 }
  0x54   :  { %p1522_p11 = pnand %p1521_p10, %p1515_p7 }
  0x56   :  { %1525 = shalt.err (!%p1522_p11)
}
  0x57   :  { %81 = dma.hbm_to_vmem [thread:$0]  %s1826_s8, 16, %s79_s23, [#allocation9]  }
  0x58   :  { %1548 = dma.done.wait [#allocation3], 1024  }
  0x59   :  { %1549 = vsyncadd [#allocation3], 4294966272 }
  0x5a   :  { %1550 = dma.done.wait [#allocation6], 8208  }
  0x5b   :  { %1551 = vsyncadd [#allocation6], 4294959088 }
  0x5c   :  { %1552 = dma.done.wait [#allocation9], 32  }
  0x5d   :  { %1553 = vsyncadd [#allocation9], 4294967264  ;;  %v1290_v0 = vld [vmem:[#allocation5 + $0x4] ss:$8 sps:$4 sm:$0xff]   ;;  %v1292_v1 = vld [vmem:[#allocation5] ss:$8 sps:$4 sm:$0xff]  }
  0x5e   :  { %510 = vmatprep.subr.bf16.mxu0 %v1290_v0  ;;  %v1293_v2 = vld [vmem:[#allocation5 + $0x14] ss:$8 sps:$4 sm:$0xff]   ;;  %v1295_v3 = vld [vmem:[#allocation5 + $0x10] ss:$8 sps:$4 sm:$0xff]   ;;  %v1296_v4 = vld [vmem:[#allocation5 + $0x24] ss:$8 sps:$4 sm:$0xff]  }
  0x5f   :  { %511 = vmatpush1.bf16.msra.mxu0 %v1292_v1  ;;  %v1298_v5 = vld [vmem:[#allocation5 + $0x20] ss:$8 sps:$4 sm:$0xff]   ;;  %v1299_v6 = vld [vmem:[#allocation5 + $0x34] ss:$8 sps:$4 sm:$0xff]   ;;  %v1301_v7 = vld [vmem:[#allocation5 + $0x30] ss:$8 sps:$4 sm:$0xff]  }
  0x60   :  { %512 = vmatprep.subr.bf16.mxu0 %v1293_v2  ;;  %v1302_v8 = vld [vmem:[#allocation5 + $0x44] ss:$8 sps:$4 sm:$0xff]   ;;  %v1304_v9 = vld [vmem:[#allocation5 + $0x40] ss:$8 sps:$4 sm:$0xff]   ;;  %v1305_v10 = vld [vmem:[#allocation5 + $0x54] ss:$8 sps:$4 sm:$0xff]  }
  0x61   :  { %v1307_v11 = vld [vmem:[#allocation5 + $0x50] ss:$8 sps:$4 sm:$0xff]   ;;  %v1308_v12 = vld [vmem:[#allocation5 + $0x64] ss:$8 sps:$4 sm:$0xff]   ;;  %v1310_v16 = vld [vmem:[#allocation5 + $0x60] ss:$8 sps:$4 sm:$0xff]  }
  0x62   :  { %v103_v13 = vld [vmem:[#allocation2 + $0x8] sm:$0xff]  ;;  %v1311_v17 = vld [vmem:[#allocation5 + $0x74] ss:$8 sps:$4 sm:$0xff]   ;;  %v1313_v18 = vld [vmem:[#allocation5 + $0x70] ss:$8 sps:$4 sm:$0xff]   ;;  %vm1566_vm0 = vmmov 0  }
  0x63   :  { %513 = vmatpush1.bf16.msra.mxu0 %v1295_v3  ;;  %v107_v14 = vld [vmem:[#allocation2 + $0x28] sm:$0xff]  ;;  %v1317_v21 = vld [vmem:[#allocation5 + $0x94] ss:$8 sps:$4 sm:$0xff]   ;;  %v1319_v22 = vld [vmem:[#allocation5 + $0x90] ss:$8 sps:$4 sm:$0xff]   ;;  %vm935_vm1 = vcmask 523264  }
  0x64   :  { %514 = vmatprep.subr.bf16.mxu0 %v1296_v4  ;;  %v111_v15 = vpack.c.bf16 %v107_v14, %v103_v13  ;;  %v1314_v19 = vld [vmem:[#allocation5 + $0x84] ss:$8 sps:$4 sm:$0xff]   ;;  %v1316_v20 = vld [vmem:[#allocation5 + $0x80] ss:$8 sps:$4 sm:$0xff]   ;;  %v1323_v25 = vld [vmem:[#allocation5 + $0xb4] ss:$8 sps:$4 sm:$0xff]  }
  0x65   :  { %v1320_v23 = vld [vmem:[#allocation5 + $0xa4] ss:$8 sps:$4 sm:$0xff]   ;;  %v1322_v24 = vld [vmem:[#allocation5 + $0xa0] ss:$8 sps:$4 sm:$0xff]   ;;  %v1325_v26 = vld [vmem:[#allocation5 + $0xb0] ss:$8 sps:$4 sm:$0xff]  }
  0x66   :  { %542 = vmatprep.mubr.bf16.mxu0 %v111_v15  ;;  %v1326_v27 = vld [vmem:[#allocation5 + $0xc4] ss:$8 sps:$4 sm:$0xff]   ;;  %v1328_v28 = vld [vmem:[#allocation5 + $0xc0] ss:$8 sps:$4 sm:$0xff]   ;;  %v1329_v29 = vld [vmem:[#allocation5 + $0xd4] ss:$8 sps:$4 sm:$0xff]  }
  0x67   :  { %515 = vmatpush1.bf16.msra.mxu0 %v1298_v5  ;;  %v1386_v30 = vld [vmem:[%s1821_s3 + $0x40] sm:$0xff]   ;;  %v1388_v32 = vld [vmem:[%s1821_s3 + $0x48] sm:$0xff]   ;;  %v1390_v34 = vld [vmem:[%s1821_s3 + $0x50] sm:$0xff]   ;;  %vm1006_vm2 = vcmask 261120  }
  0x68   :  { %516 = vmatprep.subr.bf16.mxu0 %v1299_v6  ;;  %v1387_v31 = vld [vmem:[%s1821_s3] sm:$0xff]   ;;  %1189 = vmatprep.subr.bf16.mxu1 %v1386_v30  ;;  %v1389_v33 = vld [vmem:[%s1821_s3 + $0x8] sm:$0xff]   ;;  %v1331_v35 = vld [vmem:[#allocation5 + $0xd0] ss:$8 sps:$4 sm:$0xff]  }
  0x69   :  { %1190 = vmatpush3.bf16.msra.mxu1 %v1387_v31  ;;  %v1332_v36 = vld [vmem:[#allocation5 + $0xe4] ss:$8 sps:$4 sm:$0xff]   ;;  %v1334_v37 = vld [vmem:[#allocation5 + $0xe0] ss:$8 sps:$4 sm:$0xff]   ;;  %v1391_v38 = vld [vmem:[%s1821_s3 + $0x10] sm:$0xff]  }
  0x6a   :  { %1191 = vmatprep.subr.bf16.mxu1 %v1388_v32  ;;  %v1392_v39 = vld [vmem:[%s1821_s3 + $0x58] sm:$0xff]   ;;  %v1394_v42 = vld [vmem:[%s1821_s3 + $0x60] sm:$0xff]   ;;  %v1396_v50 = vld [vmem:[%s1821_s3 + $0x68] sm:$0xff]  }
  0x6b   :  { %517 = vmatpush1.bf16.msra.mxu0 %v1301_v7  ;;  %v1335_v40 = vld [vmem:[#allocation5 + $0xf4] ss:$8 sps:$4 sm:$0xff]   ;;  %v1337_v43 = vld [vmem:[#allocation5 + $0xf0] ss:$8 sps:$4 sm:$0xff]   ;;  %v102_v44 = vld [vmem:[#allocation2] sm:$0xff] }
  0x6c   :  { %518 = vmatprep.subr.bf16.mxu0 %v1302_v8  ;;  %v1393_v41 = vld [vmem:[%s1821_s3 + $0x18] sm:$0xff]   ;;  %v106_v45 = vld [vmem:[#allocation2 + $0x20] sm:$0xff] }
  0x6d   :  { %1192 = vmatpush3.bf16.msra.mxu1 %v1389_v33  ;;  %v1340_v46 = vld [vmem:[#allocation5 + $0x104] ss:$8 sps:$4 sm:$0xff]   ;;  %v105_v47 = vld [vmem:[#allocation2 + $0x18] sm:$0xff]  ;;  %v1338_v51 = vld [vmem:[#allocation5 + $0x100] ss:$8 sps:$4 sm:$0xff]   ;;  %v110_v52 = vpack.c.bf16 %v106_v45, %v102_v44 }
  0x6e   :  { %1193 = vmatprep.subr.bf16.mxu1 %v1390_v34  ;;  %v109_v48 = vld [vmem:[#allocation2 + $0x38] sm:$0xff]  ;;  %v1395_v49 = vld [vmem:[%s1821_s3 + $0x20] sm:$0xff]  }
  0x6f   :  { %519 = vmatpush1.bf16.msra.mxu0 %v1304_v9  ;;  %v1343_v53 = vld [vmem:[#allocation5 + $0x114] ss:$8 sps:$4 sm:$0xff]   ;;  %v113_v54 = vpack.c.bf16 %v109_v48, %v105_v47  ;;  %v1341_v55 = vld [vmem:[#allocation5 + $0x110] ss:$8 sps:$4 sm:$0xff]   ;;  %v1346_v56 = vld [vmem:[#allocation5 + $0x124] ss:$8 sps:$4 sm:$0xff]  }
  0x70   :  { %520 = vmatprep.subr.bf16.mxu0 %v1305_v10  ;;  %v1344_v57 = vld [vmem:[#allocation5 + $0x120] ss:$8 sps:$4 sm:$0xff]   ;;  %v1349_v58 = vld [vmem:[#allocation5 + $0x134] ss:$8 sps:$4 sm:$0xff]   ;;  %v1347_v59 = vld [vmem:[#allocation5 + $0x130] ss:$8 sps:$4 sm:$0xff]  }
  0x71   :  { %1194 = vmatpush3.bf16.msra.mxu1 %v1391_v38  ;;  %v1352_v60 = vld [vmem:[#allocation5 + $0x144] ss:$8 sps:$4 sm:$0xff]   ;;  %v1350_v61 = vld [vmem:[#allocation5 + $0x140] ss:$8 sps:$4 sm:$0xff]   ;;  %v1355_v62 = vld [vmem:[#allocation5 + $0x154] ss:$8 sps:$4 sm:$0xff]  }
  0x72   :  { %1195 = vmatprep.subr.bf16.mxu1 %v1392_v39  ;;  %v1353_v63 = vld [vmem:[#allocation5 + $0x150] ss:$8 sps:$4 sm:$0xff]   ;;  %v1358_v0 = vld [vmem:[#allocation5 + $0x164] ss:$8 sps:$4 sm:$0xff]   ;;  %v1356_v1 = vld [vmem:[#allocation5 + $0x160] ss:$8 sps:$4 sm:$0xff]  }
  0x73   :  { %521 = vmatpush1.bf16.msra.mxu0 %v1307_v11  ;;  %v1361_v2 = vld [vmem:[#allocation5 + $0x174] ss:$8 sps:$4 sm:$0xff]   ;;  %v1359_v3 = vld [vmem:[#allocation5 + $0x170] ss:$8 sps:$4 sm:$0xff]   ;;  %v1364_v4 = vld [vmem:[#allocation5 + $0x184] ss:$8 sps:$4 sm:$0xff]  }
  0x74   :  { %522 = vmatprep.subr.bf16.mxu0 %v1308_v12  ;;  %v1362_v5 = vld [vmem:[#allocation5 + $0x180] ss:$8 sps:$4 sm:$0xff]   ;;  %v1367_v6 = vld [vmem:[#allocation5 + $0x194] ss:$8 sps:$4 sm:$0xff]   ;;  %v1365_v7 = vld [vmem:[#allocation5 + $0x190] ss:$8 sps:$4 sm:$0xff]  }
  0x75   :  { %1196 = vmatpush3.bf16.msra.mxu1 %v1393_v41  ;;  %v1370_v8 = vld [vmem:[#allocation5 + $0x1a4] ss:$8 sps:$4 sm:$0xff]   ;;  %v1368_v9 = vld [vmem:[#allocation5 + $0x1a0] ss:$8 sps:$4 sm:$0xff]   ;;  %v1373_v10 = vld [vmem:[#allocation5 + $0x1b4] ss:$8 sps:$4 sm:$0xff]  }
  0x76   :  { %1197 = vmatprep.subr.bf16.mxu1 %v1394_v42  ;;  %v1371_v11 = vld [vmem:[#allocation5 + $0x1b0] ss:$8 sps:$4 sm:$0xff]   ;;  %v1376_v12 = vld [vmem:[#allocation5 + $0x1c4] ss:$8 sps:$4 sm:$0xff]   ;;  %v1374_v13 = vld [vmem:[#allocation5 + $0x1c0] ss:$8 sps:$4 sm:$0xff]  }
  0x77   :  { %523 = vmatpush1.bf16.msra.mxu0 %v1310_v16  ;;  %v1379_v14 = vld [vmem:[#allocation5 + $0x1d4] ss:$8 sps:$4 sm:$0xff]   ;;  %v1377_v15 = vld [vmem:[#allocation5 + $0x1d0] ss:$8 sps:$4 sm:$0xff]   ;;  %v1382_v16 = vld [vmem:[#allocation5 + $0x1e4] ss:$8 sps:$4 sm:$0xff]  }
  0x78   :  { %524 = vmatprep.subr.bf16.mxu0 %v1311_v17  ;;  %v1380_v17 = vld [vmem:[#allocation5 + $0x1e0] ss:$8 sps:$4 sm:$0xff]  }
  0x79   :  { %1198 = vmatpush3.bf16.msra.mxu1 %v1395_v49  ;;  %v178_v32 = vld [vmem:[%s1820_s2] sm:$0x3] }
  0x7a   :  { %1199 = vmatprep.subr.bf16.mxu1 %v1396_v50  ;;  %v1402_v50 = vld [vmem:[%s1823_s5] sm:$0xff]  }
  0x7b   :  { %525 = vmatpush1.bf16.msra.mxu0 %v1313_v18  ;;  %v1385_v18 = vld [vmem:[#allocation5 + $0x1f4] ss:$8 sps:$4 sm:$0xff]  }
  0x7c   :  { %526 = vmatprep.subr.bf16.mxu0 %v1314_v19  ;;  %v1383_v19 = vld [vmem:[#allocation5 + $0x1f0] ss:$8 sps:$4 sm:$0xff]  }
  0x7f   :  { %527 = vmatpush1.bf16.msra.mxu0 %v1316_v20  ;;  %v104_v20 = vld [vmem:[#allocation2 + $0x10] sm:$0xff] }
  0x80   :  { %528 = vmatprep.subr.bf16.mxu0 %v1317_v21  ;;  %v108_v21 = vld [vmem:[#allocation2 + $0x30] sm:$0xff] }
  0x83   :  { %529 = vmatpush1.bf16.msra.mxu0 %v1319_v22  ;;  %v112_v22 = vpack.c.bf16 %v108_v21, %v104_v20  ;;  %v1414_v20 = vld [vmem:[%s1827_s9] sm:$0xff]   ;;  %v1415_v21 = vld [vmem:[%s1827_s9 + $0x8] sm:$0xff]   ;;  %s1567_s9 = smov [#allocation11]  }
  0x84   :  { %530 = vmatprep.subr.bf16.mxu0 %v1320_v23  ;;  %v1397_v23 = vld [vmem:[%s1821_s3 + $0x28] sm:$0xff]   ;;  %s1066_s2 = sshll.u32 %s1567_s9, 4  ;;  %s1067_s2 = int_to_ptr.vmem [resolvable:$true] %s1066_s2 }
  0x85   :  { %1200 = vmatpush3.bf16.msra.mxu1 %v1397_v23  ;;  %s1526_s29 = scalar_lea.vmem %s1067_s2, 128  ;;  %p1531_p13 = scmp.lt.s32.totalorder %s1067_s2, %s1067_s2 }
  0x86   :  { %p1527_p12 = scmp.ne.s32.totalorder %s1067_s2, %s1526_s29  ;;  %p1532_p0 = scmp.lt.s32.totalorder %s1526_s29, %s1526_s29 }
  0x87   :  { %531 = vmatpush1.bf16.msra.mxu0 %v1322_v24  ;;  %v1398_v24 = vld [vmem:[%s1821_s3 + $0x70] sm:$0xff]  }
  0x88   :  { %532 = vmatprep.subr.bf16.mxu0 %v1323_v25  ;;  %v1399_v25 = vld [vmem:[%s1821_s3 + $0x30] sm:$0xff]   ;;  %1201 = vmatprep.subr.bf16.mxu1 %v1398_v24  ;;  %p1533_p1 = por %p1532_p0, %p1531_p13 }
  0x89   :  { %1202 = vmatpush3.bf16.msra.mxu1 %v1399_v25 }
  0x8a   :  { %p1534_p2 = pnand %p1533_p1, %p1527_p12 }
  0x8b   :  { %533 = vmatpush1.bf16.msra.mxu0 %v1325_v26  ;;  %v1400_v26 = vld [vmem:[%s1821_s3 + $0x78] sm:$0xff]  }
  0x8c   :  { %534 = vmatprep.subr.bf16.mxu0 %v1326_v27  ;;  %v1401_v27 = vld [vmem:[%s1821_s3 + $0x38] sm:$0xff]   ;;  %1203 = vmatprep.subr.bf16.mxu1 %v1400_v26 }
  0x8d   :  { %1204 = vmatpush3.bf16.msra.mxu1 %v1401_v27 }
  0x8f   :  { %535 = vmatpush1.bf16.msra.mxu0 %v1328_v28  ;;  %v1565_v28 = vmov 0.0  }
  0x90   :  { %536 = vmatprep.subr.bf16.mxu0 %v1329_v29  ;;  %1228 = vmatprep.subr.bf16.mxu1 %v1565_v28  ;;  %v180_v29 = vlaneseq }
  0x92   :  { %v181_v30 = vshrl.u32 %v180_v29, 7 }
  0x93   :  { %537 = vmatpush1.bf16.msra.mxu0 %v1331_v35 }
  0x94   :  { %538 = vmatprep.subr.bf16.mxu0 %v1332_v36  ;;  %v182_v31 = vsub.s32 0, %v181_v30  ;;  %v186_v33 = vsub.s32 1, %v181_v30 }
  0x96   :  { %v183_v34 = vrot.slane %v178_v32, %v182_v31  ;;  %v187_v35 = vrot.slane %v178_v32, %v186_v33 }
  0x97   :  { %539 = vmatpush1.bf16.msra.mxu0 %v1334_v37 }
  0x98   :  { %540 = vmatprep.subr.bf16.mxu0 %v1335_v40 }
  0x9b   :  { %541 = vmatpush1.bf16.msra.mxu0 %v1337_v43 }
  0x9c   :  { %553 = vmatprep.subr.bf16.mxu0 %v1340_v46 }
  0x9e   :  { %543 = vmatmul.mubr.bf16.vlgmr.msra.gmra.mrb[0].mxu0 %v110_v52  ;;  %v1404_v52 = vld [vmem:[%s1823_s5 + $0x10] sm:$0xff]  }
  0x9f   :  { %554 = vmatpush1.bf16.msra.mxu0 %v1338_v51  ;;  %585 = vmatprep.mubr.bf16.mxu0 %v113_v54  ;;  %v1403_v51 = vld [vmem:[%s1823_s5 + $0x8] sm:$0xff]   ;;  %v1406_v54 = vld [vmem:[%s1823_s5 + $0x20] sm:$0xff]  }
  0xa0   :  { %555 = vmatprep.subr.bf16.mxu0 %v1343_v53  ;;  %v1405_v53 = vld [vmem:[%s1823_s5 + $0x18] sm:$0xff]  }
  0xa3   :  { %556 = vmatpush1.bf16.msra.mxu0 %v1341_v55  ;;  %v1407_v55 = vld [vmem:[%s1823_s5 + $0x28] sm:$0xff]  }
  0xa4   :  { %557 = vmatprep.subr.bf16.mxu0 %v1346_v56  ;;  %v1408_v56 = vld [vmem:[%s1823_s5 + $0x30] sm:$0xff]  }
  0xa7   :  { %558 = vmatpush1.bf16.msra.mxu0 %v1344_v57  ;;  %v1409_v57 = vld [vmem:[%s1823_s5 + $0x38] sm:$0xff]  }
  0xa8   :  { %559 = vmatprep.subr.bf16.mxu0 %v1349_v58 }
  0xab   :  { %560 = vmatpush1.bf16.msra.mxu0 %v1347_v59  ;;  %v1144_v59 = vld [vmem:[#allocation7] ss:$0 sm:$0xff] }
  0xac   :  { %561 = vmatprep.subr.bf16.mxu0 %v1352_v60 }
  0xaf   :  { %562 = vmatpush1.bf16.msra.mxu0 %v1350_v61 }
  0xb0   :  { %563 = vmatprep.subr.bf16.mxu0 %v1355_v62 }
  0xb3   :  { %564 = vmatpush1.bf16.msra.mxu0 %v1353_v63 }
  0xb4   :  { %565 = vmatprep.subr.bf16.mxu0 %v1358_v0 }
  0xb7   :  { %566 = vmatpush1.bf16.msra.mxu0 %v1356_v1 }
  0xb8   :  { %567 = vmatprep.subr.bf16.mxu0 %v1361_v2 }
  0xbb   :  { %568 = vmatpush1.bf16.msra.mxu0 %v1359_v3 }
  0xbc   :  { %569 = vmatprep.subr.bf16.mxu0 %v1364_v4 }
  0xbf   :  { %570 = vmatpush1.bf16.msra.mxu0 %v1362_v5  ;;  %v1410_v5 = vld [vmem:[%s1825_s7] sm:$0xff]  }
  0xc0   :  { %571 = vmatprep.subr.bf16.mxu0 %v1367_v6 }
  0xc3   :  { %572 = vmatpush1.bf16.msra.mxu0 %v1365_v7  ;;  %v1411_v7 = vld [vmem:[%s1825_s7 + $0x8] sm:$0xff]  }
  0xc4   :  { %573 = vmatprep.subr.bf16.mxu0 %v1370_v8  ;;  %v1412_v8 = vld [vmem:[%s1825_s7 + $0x10] sm:$0xff]  }
  0xc7   :  { %574 = vmatpush1.bf16.msra.mxu0 %v1368_v9  ;;  %v1413_v9 = vld [vmem:[%s1825_s7 + $0x18] sm:$0xff]  }
  0xc8   :  { %575 = vmatprep.subr.bf16.mxu0 %v1373_v10  ;;  %v1161_v10 = vld [vmem:[#allocation8] ss:$0 sm:$0xff] }
  0xcb   :  { %576 = vmatpush1.bf16.msra.mxu0 %v1371_v11 }
  0xcc   :  { %577 = vmatprep.subr.bf16.mxu0 %v1376_v12 }
  0xcf   :  { %578 = vmatpush1.bf16.msra.mxu0 %v1374_v13 }
  0xd0   :  { %579 = vmatprep.subr.bf16.mxu0 %v1379_v14 }
  0xd3   :  { %580 = vmatpush1.bf16.msra.mxu0 %v1377_v15 }
  0xd4   :  { %581 = vmatprep.subr.bf16.mxu0 %v1382_v16 }
  0xd7   :  { %582 = vmatpush1.bf16.msra.mxu0 %v1380_v17 }
  0xd8   :  { %583 = vmatprep.subr.bf16.mxu0 %v1385_v18 }
  0xdb   :  { %584 = vmatpush1.bf16.msra.mxu0 %v1383_v19 }
  0xde   :  { %586 = vmatmul.mubr.bf16.vlgmr.msra.gmra.mrb[0].mxu0 %v112_v22  ;;  %v1170_v22 = vld [vmem:[#allocation10] ss:$0 sm:$0xff] }
 0x1b1   :  { %v587_v36 = vpop.f32.mrb[0].mxu0 }
 0x1b2   :  { %v1268_v37 = vadd.f32 %v587_v36, %v183_v34  ;;  %v589_v38 = vpop.f32.mrb[1].mxu0 }
 0x1b3   :  { %v1269_v39 = vadd.f32 %v589_v38, %v187_v35  ;;  %v591_v40 = vpop.f32.mrb[2].mxu0 }
 0x1b4   :  { %v1270_v41 = vadd.f32 %v591_v40, %v183_v34  ;;  %v593_v42 = vpop.f32.mrb[3].mxu0  ;;  %v596_v44 = vmax.f32 %v1268_v37, 0.0 }
 0x1b5   :  { %v1271_v43 = vadd.f32 %v593_v42, %v187_v35  ;;  %v597_v46 = vmax.f32 %v1269_v39, 0.0 }
 0x1b6   :  { %v598_v45 = vmax.f32 %v1270_v41, 0.0 }
 0x1b7   :  { %v599_v47 = vmax.f32 %v1271_v43, 0.0 }
 0x1b8   :  { %v600_v48 = vpack.c.bf16 %v598_v45, %v596_v44 }
 0x1b9   :  { %v601_v49 = vpack.c.bf16 %v599_v47, %v597_v46 }
 0x1bb   :  { %769 = vmatprep.mubr.bf16.mxu1 %v601_v49 }
 0x1bc   :  { %770 = vmatmul.mubr.bf16.vlgmr.msra.gmra.mrb[0].mxu1 %v600_v48 }
 0x1bd   :  { %1229 = vmatpush3.bf16.msra.mxu1 %v1402_v50  ;;  %1244 = vmatprep.mubr.msk.bf16.mxu1 %vm1566_vm0, %v1565_v28 }
 0x1be   :  { %1230 = vmatprep.subr.bf16.mxu1 %v1565_v28 }
 0x1c1   :  { %1231 = vmatpush3.bf16.msra.mxu1 %v1403_v51 }
 0x1c2   :  { %1232 = vmatprep.subr.bf16.mxu1 %v1565_v28 }
 0x1c5   :  { %1233 = vmatpush3.bf16.msra.mxu1 %v1404_v52 }
 0x1c6   :  { %1234 = vmatprep.subr.bf16.mxu1 %v1565_v28 }
 0x1c9   :  { %1235 = vmatpush3.bf16.msra.mxu1 %v1405_v53 }
 0x1ca   :  { %1236 = vmatprep.subr.bf16.mxu1 %v1565_v28 }
 0x1cd   :  { %1237 = vmatpush3.bf16.msra.mxu1 %v1406_v54 }
 0x1ce   :  { %1238 = vmatprep.subr.bf16.mxu1 %v1565_v28 }
 0x1d1   :  { %1239 = vmatpush3.bf16.msra.mxu1 %v1407_v55 }
 0x1d2   :  { %1240 = vmatprep.subr.bf16.mxu1 %v1565_v28 }
 0x1d5   :  { %1241 = vmatpush3.bf16.msra.mxu1 %v1408_v56 }
 0x1d6   :  { %1242 = vmatprep.subr.bf16.mxu1 %v1565_v28 }
 0x1d9   :  { %1243 = vmatpush3.bf16.msra.mxu1 %v1409_v57 }
 0x1da   :  { %1248 = vmatprep.subr.bf16.mxu1 %v1565_v28 }
 0x28f   :  { %v1205_v58 = vpop.f32.mrb[0].mxu1 }
 0x290   :  { %v1206_v60 = vpop.f32.mrb[1].mxu1 }
 0x291   :  { %v1207_v61 = vadd.f32 %v1206_v60, %v1205_v58  ;;  %v1208_v62 = vpop.f32.mrb[2].mxu1 }
 0x292   :  { %v1209_v63 = vpop.f32.mrb[3].mxu1 }
 0x293   :  { %v772_v0 = vadd.f32 %v1207_v61, %v1144_v59  ;;  %v1210_v1 = vadd.f32 %v1209_v63, %v1208_v62 }
 0x295   :  { %v775_v2 = vadd.f32 %v1210_v1, %v1144_v59  ;;  %v778_v3 = vmax.f32 %v772_v0, 0.0 }
 0x297   :  { %v779_v4 = vmax.f32 %v775_v2, 0.0 }
 0x299   :  { %v780_v6 = vpack.c.bf16 %v779_v4, %v778_v3 }
 0x29b   :  { %1245 = vmatmul.mubr.bf16.vlgmr.msra.gmra.mrb[4].mxu1 %v780_v6 }
 0x29c   :  { %1249 = vmatpush3.bf16.msra.mxu1 %v1410_v5  ;;  %1256 = vmatprep.mubr.msk.bf16.mxu1 %vm1566_vm0, %v1565_v28 }
 0x29d   :  { %1250 = vmatprep.subr.bf16.mxu1 %v1565_v28 }
 0x2a0   :  { %1251 = vmatpush3.bf16.msra.mxu1 %v1411_v7 }
 0x2a1   :  { %1252 = vmatprep.subr.bf16.mxu1 %v1565_v28 }
 0x2a4   :  { %1253 = vmatpush3.bf16.msra.mxu1 %v1412_v8 }
 0x2a5   :  { %1254 = vmatprep.subr.bf16.mxu1 %v1565_v28 }
 0x2a8   :  { %1255 = vmatpush3.bf16.msra.mxu1 %v1413_v9 }
 0x2a9   :  { %1260 = vmatprep.subr.bf16.mxu1 %v1565_v28 }
 0x36e   :  { %v886_v11 = vpop.f32.mrb[4].mxu1 }
 0x36f   :  { %v887_v12 = vadd.f32 %v1161_v10, %v886_v11  ;;  %v1246_v13 = vpop.f32.mrb[5].mxu1 }
 0x370   :  { %v889_v14 = vpop.f32.mrb[6].mxu1 }
 0x371   :  { %v890_v15 = vadd.f32 %v1161_v10, %v889_v14  ;;  %v1247_v16 = vpop.f32.mrb[7].mxu1  ;;  %v893_v17 = vmax.f32 %v887_v12, 0.0 }
 0x373   :  { %v894_v18 = vmax.f32 %v890_v15, 0.0 }
 0x375   :  { %v895_v19 = vpack.c.bf16 %v894_v18, %v893_v17 }
 0x377   :  { %1257 = vmatmul.mubr.msk.bf16.vlgmr.msra.gmra.mrb[8].mxu1 %vm935_vm1, %v895_v19 }
 0x378   :  { %1264 = vmatprep.mubr.msk.bf16.mxu1 %vm1566_vm0, %v1565_v28  ;;  %1261 = vmatpush3.bf16.msra.mxu1 %v1414_v20 }
 0x379   :  { %1262 = vmatprep.subr.bf16.mxu1 %v1565_v28  ;;  %v1176_v28 = vld [vmem:[%s1828_s10] ss:$0 sm:$0xff] }
 0x37c   :  { %1263 = vmatpush3.bf16.msra.mxu1 %v1415_v21 }
 0x44a   :  { %v973_v23 = vpop.f32.mrb[8].mxu1 }
 0x44b   :  { %v974_v24 = vadd.f32 %v1170_v22, %v973_v23  ;;  %v1258_v25 = vpop.f32.mrb[9].mxu1 }
 0x44c   :  { %v976_v26 = vpop.f32.mrb[10].mxu1 }
 0x44d   :  { %v977_v27 = vadd.f32 %v1170_v22, %v976_v26  ;;  %v1259_v29 = vpop.f32.mrb[11].mxu1  ;;  %v980_v30 = vmax.f32 %v974_v24, 0.0 }
 0x44f   :  { %v981_v31 = vmax.f32 %v977_v27, 0.0 }
 0x451   :  { %v982_v32 = vpack.c.bf16 %v981_v31, %v980_v30 }
 0x453   :  { %1265 = vmatmul.mubr.msk.bf16.vlgmr.msra.gmra.mrb[12].mxu1 %vm1006_vm2, %v982_v32 }
 0x526   :  { %v1044_v33 = vpop.f32.mrb[12].mxu1 }
 0x527   :  { %v1266_v34 = vpop.f32.mrb[13].mxu1  ;;  %v1045_v36 = vadd.f32 %v1176_v28, %v1044_v33 }
 0x528   :  { %v1047_v35 = vpop.f32.mrb[14].mxu1 }
 0x529   :  { %v1048_v37 = vadd.f32 %v1176_v28, %v1047_v35  ;;  %v1267_v38 = vpop.f32.mrb[15].mxu1 }
 0x52b   :  { %v1187_v39 = vpack.c.bf16 %v1048_v37, %v1045_v36 }
 0x52d   :  { %1188 = vst [vmem:[#allocation11] sm:$0xff] %v1187_v39  }
 0x52e   :  { %1537 = shalt.err (!%p1534_p2)
}
 0x52f   :  { %s1538_s12 = scalar_lea.hbm %s1829_s11, 128 }
 0x530   :  { %p1539_p3 = scmp.ne.s32.totalorder %s1829_s11, %s1538_s12  ;;  %p1542_p4 = scmp.lt.u32.totalorder %s1538_s12, %s1829_s11 }
 0x532   :  { %p1544_p5 = pnand %p1542_p4, %p1539_p3 }
 0x534   :  { %1547 = shalt.err (!%p1544_p5)
}
 0x535   :  { %s1568_s17 = smov 64   ;;  %s1569_s19 = smov 4  }
 0x536   :  { %1072 = dma.vmem_to_hbm [thread:$0]  %s1067_s2, 128, %s1829_s11, [#allocation4], %s1568_s17, %s1568_s17, %s1569_s19  }
 0x537   :  { %1554 = dma.done.wait [#allocation4], 128  }
 0x538   :  { %1555 = vsyncadd [#allocation4], 4294967168 }
 0x539   :  { %1076 = vsyncpa [#allocation3], 1 }
 0x53a   :  { %1077 = vsyncpa [#allocation6], 1 }
 0x53b   :  { %1078 = vsyncpa [#allocation9], 1 }
 0x53c   :  { %1079 = vsyncpa [#allocation4], 1 }

</bundles_post_ra>
